<compile_context>
chip_gen: v7x
topology: tpu7x:2x2x1
jax: 0.10.0
libtpu: 0.0.40
codegen_flags: <defaults>
</compile_context>

<pallas_src>
import functools

import jax
import jax.numpy as jnp
from jax import lax
from jax.experimental import pallas as pl
from jax.experimental.pallas import tpu as pltpu

_LANE = 128
_HEADROOM = 2 << 20          # per-call slack for compiler-internal temporaries


# ---------------------------------------------------------------------------
# Kernel bodies
# ---------------------------------------------------------------------------
def _softmax_wt(a):
    """Given a (bit-exactly symmetric) f32 Gram matrix `a` (..., C, C), return
    W^T where W = softmax(rowmax(A) - A, dim=-2), i.e. the CAM attention
    matrix transposed.  Working on W^T keeps the max/exp/sum reductions on the
    lane (fast) axis."""
    # rowmax over j of row q == max over the first index of column q, because
    # A is bit-exactly symmetric (identical operand on both sides of the dot).
    r = jnp.max(a, axis=-2, keepdims=True)            # (..., 1, C)
    et = r - a                                        # == E^T
    m = jnp.max(et, axis=-1, keepdims=True)           # lane reduce
    e = jnp.exp(et - m)
    denom = jnp.sum(e, axis=-1, keepdims=True)        # lane reduce
    # Exact divide: pl.reciprocal(approx=True)'s interpret-mode fallback is a
    # bf16 reciprocal and breaks 2e-3 parity with the PyTorch reference.
    return e / denom                                   # W^T, f32


def cam_fused_kernel(gamma_ref, x_ref, o_ref, *, apply_dtype):
    """One grid step processes TB whole (C, N) slabs resident in VMEM."""
    x = x_ref[...]                                     # (TB, C, N), native dtype

    # Gram matrix A[b, i, j] = <x_i, x_j>: contract N, no explicit transpose.
    a = lax.dot_general(
        x, x,
        dimension_numbers=(((2,), (2,)), ((0,), (0,))),
        preferred_element_type=jnp.float32)            # (TB, C, C), f32 accum

    wt = _softmax_wt(a)                                # W^T, f32

    # out[b, q, n] = sum_j W[b, q, j] x[b, j, n] = sum_j W^T[b, j, q] x[b, j, n]
    out = lax.dot_general(
        wt.astype(apply_dtype), x.astype(apply_dtype),
        dimension_numbers=(((1,), (1,)), ((0,), (0,))),
        preferred_element_type=jnp.float32)            # (TB, C, N), f32

    gamma = gamma_ref[0]
    # Residual folded in the output dtype (no f32 upcast of the whole slab).
    o_ref[...] = (gamma * out).astype(o_ref.dtype) + x


def cam_gram_softmax_kernel(x_ref, w_ref):
    """N-tiled pass 1: accumulate A over N tiles for one batch, then turn it
    into W^T on the last tile.  The (1, C, C) output block index is constant
    along the N grid axis, so it stays resident in VMEM as the accumulator."""
    k = pl.program_id(1)

    @pl.when(k == 0)
    def _():
        w_ref[...] = jnp.zeros_like(w_ref)

    xt = x_ref[0]                                      # (C, TN), native dtype
    w_ref[0] += lax.dot_general(
        xt, xt,
        dimension_numbers=(((1,), (1,)), ((), ())),
        preferred_element_type=jnp.float32)            # (C, C) Gram tile

    @pl.when(k == pl.num_programs(1) - 1)
    def _():
        w_ref[0] = _softmax_wt(w_ref[0])


def cam_apply_kernel(gamma_ref, w_ref, x_ref, o_ref, *, apply_dtype):
    """N-tiled pass 2: out tile = gamma * (W @ x_tile) + x_tile."""
    wt = w_ref[0].astype(apply_dtype)                  # (C, C) == W^T
    xt = x_ref[0]                                      # (C, TN)
    out = lax.dot_general(
        wt, xt.astype(apply_dtype),
        dimension_numbers=(((0,), (0,)), ((), ())),    # contract the j index
        preferred_element_type=jnp.float32)            # (C, TN), f32
    gamma = gamma_ref[0]
    o_ref[0] = (gamma * out).astype(o_ref.dtype) + xt


# ---------------------------------------------------------------------------
# Sizing (generation-aware VMEM budgets, full per-step footprint)
# ---------------------------------------------------------------------------
def _vmem_capacity_bytes():
    try:
        cap = int(pltpu.get_tpu_info().vmem_capacity_bytes)
        if cap > 0:
            return cap
    except Exception:
        pass
    return 64 << 20     # conservative default (v7x per-TensorCore VMEM)


def _fused_footprint(tb, c, n_pad, itemsize, apply_itemsize):
    io = 2 * 2 * tb * c * n_pad * itemsize            # dbuf in + out slabs
    sq = 5 * tb * c * c * 4                           # a / et / e / wt + reduces
    sq += tb * c * c * apply_itemsize                 # wt cast feed to the MXU
    tmp = tb * c * n_pad * 4                          # f32 (W @ x) result
    if apply_itemsize != itemsize:
        tmp += tb * c * n_pad * apply_itemsize        # x cast copy
    return io + sq + tmp


def _gram_footprint(c, tn, itemsize):
    return (2 * c * tn * itemsize                     # dbuf x tiles
            + 2 * c * c * 4                           # dbuf W output block
            + 3 * c * c * 4)                          # Gram tile + softmax temps


def _apply_footprint(c, tn, itemsize, apply_itemsize):
    return (2 * c * tn * itemsize                     # dbuf x tiles
            + 2 * c * tn * itemsize                   # dbuf out tiles
            + 2 * c * c * 4                           # dbuf W block
            + c * c * apply_itemsize                  # W cast
            + c * tn * 4                              # f32 matmul result
            + (c * tn * apply_itemsize if apply_itemsize != itemsize else 0))


def _pick_tb(b, c, n_pad, itemsize, apply_itemsize, budget, min_steps):
    """Largest divisor of b whose full per-step footprint fits the budget
    while keeping at least `min_steps` grid steps (pipelining / megacore)."""
    for tb in range(b, 0, -1):
        if b % tb:
            continue
        if b // tb < min_steps:
            continue
        if _fused_footprint(tb, c, n_pad, itemsize, apply_itemsize) + _HEADROOM <= budget:
            return tb
    return None


def _pick_n_tile(c, n_pad, itemsize, apply_itemsize, budget):
    units = n_pad // _LANE
    for d in range(units, 0, -1):
        if units % d:
            continue
        tn = d * _LANE
        fp = max(_gram_footprint(c, tn, itemsize),
                 _apply_footprint(c, tn, itemsize, apply_itemsize))
        if fp + _HEADROOM <= budget:
            return tn
    return _LANE


# ---------------------------------------------------------------------------
# Public wrapper
# ---------------------------------------------------------------------------
def cam_forward(x, gamma, *, mxu_dtype=None, force_tiled=False, n_tile=None):
    """CAM forward: gamma * (softmax-attention @ x) + x.

    x: (B, C, N); gamma: shape-(1,) parameter (PyTorch nn.Parameter(zeros(1))).
    mxu_dtype: optional dtype (e.g. jnp.bfloat16) for the attention-apply
      matmul operands when x is f32 (W in [0, 1] -> safe); None = native.
    force_tiled / n_tile: testing hooks for the N-tiled two-pass path.
    """
    b, c, n = x.shape
    assert gamma.shape == (1,)

    # Lane-dense padding of N: zero columns change neither the Gram matrix nor
    # the kept output columns; the pad is sliced off at the end.
    n_pad = pl.cdiv(n, _LANE) * _LANE
    xp = x if n_pad == n else jnp.pad(x, ((0, 0), (0, 0), (0, n_pad - n)))
    gamma = gamma.astype(jnp.float32)

    itemsize = jnp.dtype(x.dtype).itemsize
    apply_dtype = jnp.dtype(mxu_dtype) if mxu_dtype is not None else jnp.dtype(x.dtype)
    apply_itemsize = apply_dtype.itemsize

    cap = _vmem_capacity_bytes()
    budget = int(cap * 0.75)          # leave room for compiler-internal scratch
    limit_cap = int(cap * 0.90)

    # >= 2 grid steps so input DMA / compute / writeback pipeline and both v7x
    # TensorCores get work; >= 4 when the batch allows it.
    min_steps = 1 if b == 1 else (4 if b >= 8 else 2)

    tb = None if force_tiled else _pick_tb(
        b, c, n_pad, itemsize, apply_itemsize, budget, min_steps)

    if tb is not None:
        # ---------------- fused single-pass path (slab fits VMEM) ----------
        fp = _fused_footprint(tb, c, n_pad, itemsize, apply_itemsize)
        vmem_limit = min(limit_cap, max(fp + 2 * _HEADROOM, 16 << 20))
        out = pl.pallas_call(
            functools.partial(cam_fused_kernel, apply_dtype=apply_dtype),
            out_shape=jax.ShapeDtypeStruct((b, c, n_pad), x.dtype),
            grid_spec=pltpu.PrefetchScalarGridSpec(
                num_scalar_prefetch=0,
                grid=(b // tb,),
                in_specs=[
                    pl.BlockSpec(memory_space=pltpu.MemorySpace.SMEM),   # gamma
                    pl.BlockSpec((tb, c, n_pad), lambda i: (i, 0, 0)),   # x
                ],
                out_specs=pl.BlockSpec((tb, c, n_pad), lambda i: (i, 0, 0)),
            ),
            compiler_params=pltpu.CompilerParams(
                dimension_semantics=("parallel",),
                vmem_limit_bytes=vmem_limit),
        )(gamma, xp)
        return out if n_pad == n else out[:, :, :n]

    # ---------------- N-tiled two-pass path (large C * N) -------------------
    if n_tile is None:
        tn = _pick_n_tile(c, n_pad, itemsize, apply_itemsize, budget)
    else:
        tn = int(n_tile)
        assert tn % _LANE == 0 and n_pad % tn == 0
    nt = n_pad // tn

    # Pass 1: accumulate the Gram matrix over N tiles, emit W^T per batch.
    fp1 = _gram_footprint(c, tn, itemsize)
    wt = pl.pallas_call(
        cam_gram_softmax_kernel,
        out_shape=jax.ShapeDtypeStruct((b, c, c), jnp.float32),
        grid_spec=pltpu.PrefetchScalarGridSpec(
            num_scalar_prefetch=0,
            grid=(b, nt),
            in_specs=[pl.BlockSpec((1, c, tn), lambda i, k: (i, 0, k))],
            out_specs=pl.BlockSpec((1, c, c), lambda i, k: (i, 0, 0)),
        ),
        compiler_params=pltpu.CompilerParams(
            dimension_semantics=("parallel", "arbitrary"),
            vmem_limit_bytes=min(limit_cap, max(fp1 + 2 * _HEADROOM, 16 << 20))),
    )(xp)

    # Pass 2: stream N tiles again for gamma * (W @ x) + x.
    fp2 = _apply_footprint(c, tn, itemsize, apply_itemsize)
    out = pl.pallas_call(
        functools.partial(cam_apply_kernel, apply_dtype=apply_dtype),
        out_shape=jax.ShapeDtypeStruct((b, c, n_pad), x.dtype),
        grid_spec=pltpu.PrefetchScalarGridSpec(
            num_scalar_prefetch=0,
            grid=(b, nt),
            in_specs=[
                pl.BlockSpec(memory_space=pltpu.MemorySpace.SMEM),        # gamma
                pl.BlockSpec((1, c, c), lambda i, k: (i, 0, 0)),          # W^T
                pl.BlockSpec((1, c, tn), lambda i, k: (i, 0, k)),         # x
            ],
            out_specs=pl.BlockSpec((1, c, tn), lambda i, k: (i, 0, k)),
        ),
        compiler_params=pltpu.CompilerParams(
            dimension_semantics=("parallel", "parallel"),
            vmem_limit_bytes=min(limit_cap, max(fp2 + 2 * _HEADROOM, 16 << 20))),
    )(gamma, wt, xp)

    return out if n_pad == n else out[:, :, :n]


# ---------------------------------------------------------------------------
# Pure-JAX reference mirroring the PyTorch module (softmax over dim=1).
# HIGHEST precision so the real-TPU reference is not bf16-truncated (the
# peaked softmax amplifies Gram-matrix errors).
# ---------------------------------------------------------------------------
def cam_reference(x, gamma):
    hp = lax.Precision.HIGHEST
    a = jnp.einsum("bcn,bdn->bcd", x, x, precision=hp)
    energy = jnp.max(a, axis=-1, keepdims=True) - a
    attn = jax.nn.softmax(energy, axis=1)
    out = jnp.einsum("bcd,bdn->bcn", attn, x, precision=hp)
    return gamma[0] * out + x


if __name__ == "__main__":
    key = jax.random.PRNGKey(0)
    k1, k2, k3 = jax.random.split(key, 3)

    # Case 1: lane-aligned N, module-default gamma (zeros) and nonzero gamma.
    B, C, N = 2, 8, 128
    x = jax.random.normal(k1, (B, C, N), dtype=jnp.float32)

    gamma0 = jnp.zeros((1,), dtype=jnp.float32)       # nn.Parameter(torch.zeros(1))
    out = cam_forward(x, gamma0)
    jax.block_until_ready(out)
    assert jnp.allclose(out, cam_reference(x, gamma0), atol=1e-5)

    gamma = jnp.array([0.5], dtype=jnp.float32)
    out = cam_forward(x, gamma)
    jax.block_until_ready(out)
    assert jnp.allclose(out, cam_reference(x, gamma), rtol=2e-3, atol=2e-3)

    # Case 2: ragged N (exercises lane-dense padding) and larger C; fused path.
    x2 = jax.random.normal(k2, (2, 16, 192), dtype=jnp.float32)
    out2 = cam_forward(x2, gamma)
    jax.block_until_ready(out2)
    assert out2.shape == x2.shape
    assert jnp.allclose(out2, cam_reference(x2, gamma), rtol=2e-3, atol=2e-3)

    # Case 3: N-tiled two-pass path (forced) with ragged N and 3 N-tiles.
    x3 = jax.random.normal(k3, (2, 16, 320), dtype=jnp.float32)
    out3 = cam_forward(x3, gamma, force_tiled=True, n_tile=128)
    jax.block_until_ready(out3)
    assert out3.shape == x3.shape
    assert jnp.allclose(out3, cam_reference(x3, gamma), rtol=2e-3, atol=2e-3)

    print("KERNEL_OK")
</pallas_src>

<mosaic_0001>
module attributes {stable_mosaic.version = 11 : i64} {
  func.func @cam_fused_kernel(%arg0: i32, %arg1: memref<1xf32, #tpu.memory_space<smem>>, %arg2: memref<1x8x128xf32, #tpu.memory_space<vmem>>, %arg3: memref<1x8x128xf32, #tpu.memory_space<vmem>>) attributes {dimension_semantics = [#tpu.dimension_semantics<parallel>], iteration_bounds = array<i64: 2>, scalar_prefetch = 0 : i64, scratch_operands = 0 : i64, tpu.core_type = #tpu.core_type<tc>, window_params = [{transform_indices = @transform_0, window_bounds = array<i64: 1>}, {transform_indices = @transform_1, window_bounds = array<i64: 1, 8, 128>}, {transform_indices = @transform_2, window_bounds = array<i64: 1, 8, 128>}]} {
    %c0 = arith.constant 0 : index
    %c0_0 = arith.constant 0 : index
    %c0_1 = arith.constant 0 : index
    %0 = vector.load %arg2[%c0, %c0_0, %c0_1] : memref<1x8x128xf32, #tpu.memory_space<vmem>>, vector<1x8x128xf32>
    %cst = arith.constant dense<0.000000e+00> : vector<1x8x8xf32>
    %1 = tpu.matmul %0, %0, %cst {dimension_numbers = #tpu.dot_dimension_numbers<[2], [2], [1], [1], [0, 0, 0, 1, 1, 1], [0], [0]>} : vector<1x8x128xf32>, vector<1x8x128xf32>, vector<1x8x8xf32> -> vector<1x8x8xf32>
    %cst_2 = arith.constant dense<0xFF800000> : vector<1x8xf32>
    %2 = vector.multi_reduction <maximumf>, %1, %cst_2 [1] : vector<1x8x8xf32> to vector<1x8xf32>
    %3 = vector.shape_cast %2 : vector<1x8xf32> to vector<1x1x8xf32>
    %4 = vector.broadcast %3 : vector<1x1x8xf32> to vector<1x8x8xf32>
    %5 = arith.subf %4, %1 : vector<1x8x8xf32>
    %cst_3 = arith.constant dense<0xFF800000> : vector<1x8xf32>
    %6 = vector.multi_reduction <maximumf>, %5, %cst_3 [2] : vector<1x8x8xf32> to vector<1x8xf32>
    %7 = vector.shape_cast %6 : vector<1x8xf32> to vector<1x8x1xf32>
    %8 = vector.broadcast %7 : vector<1x8x1xf32> to vector<1x8x8xf32>
    %9 = arith.subf %5, %8 : vector<1x8x8xf32>
    %10 = math.exp %9 : vector<1x8x8xf32>
    %cst_4 = arith.constant dense<0.000000e+00> : vector<1x8xf32>
    %11 = vector.multi_reduction <add>, %10, %cst_4 [2] : vector<1x8x8xf32> to vector<1x8xf32>
    %12 = vector.shape_cast %11 : vector<1x8xf32> to vector<1x8x1xf32>
    %13 = vector.broadcast %12 : vector<1x8x1xf32> to vector<1x8x8xf32>
    %14 = arith.divf %10, %13 : vector<1x8x8xf32>
    %cst_5 = arith.constant dense<0.000000e+00> : vector<1x8x128xf32>
    %15 = tpu.matmul %14, %0, %cst_5 {dimension_numbers = #tpu.dot_dimension_numbers<[1], [1], [2], [2], [0, 0, 0, 2, 1, 2], [0], [0]>} : vector<1x8x8xf32>, vector<1x8x128xf32>, vector<1x8x128xf32> -> vector<1x8x128xf32>
    %c0_6 = arith.constant 0 : index
    %16 = memref.load %arg1[%c0_6] : memref<1xf32, #tpu.memory_space<smem>>
    %17 = vector.broadcast %16 : f32 to vector<1x8x128xf32>
    %18 = arith.mulf %17, %15 : vector<1x8x128xf32>
    %19 = arith.addf %18, %0 : vector<1x8x128xf32>
    %c0_7 = arith.constant 0 : index
    %c0_8 = arith.constant 0 : index
    %c0_9 = arith.constant 0 : index
    %20 = vector.load %arg3[%c0_7, %c0_8, %c0_9] : memref<1x8x128xf32, #tpu.memory_space<vmem>>, vector<1x8x128xf32>
    tpu.vector_store %arg3[%c0_7, %c0_8, %c0_9], %19 {strides = array<i32>} : memref<1x8x128xf32, #tpu.memory_space<vmem>>, vector<1x8x128xf32>,
    return
  }
  func.func @transform_0(%arg0: i32) -> i32 {
    %c0_i32 = arith.constant 0 : i32
    %c0_i32_0 = arith.constant 0 : i32
    return %c0_i32 : i32
  }
  func.func @transform_1(%arg0: i32) -> (i32, i32, i32) {
    %c0_i32 = arith.constant 0 : i32
    %c0_i32_0 = arith.constant 0 : i32
    %c0_i32_1 = arith.constant 0 : i32
    return %arg0, %c0_i32, %c0_i32_0 : i32, i32, i32
  }
  func.func @transform_2(%arg0: i32) -> (i32, i32, i32) {
    %c0_i32 = arith.constant 0 : i32
    %c0_i32_0 = arith.constant 0 : i32
    %c0_i32_1 = arith.constant 0 : i32
    return %arg0, %c0_i32, %c0_i32_0 : i32, i32, i32
  }
}

</mosaic_0001>

<bundles_post_ra>
// kernel: tpu_custom_call.1
= control target key start
LH: loop header
LB: loop body
LE: loop exit
PB: predicated region body
PF: predicated region fallthrough
CT: control target
= control target key end

     0   :  { %s813_s0 = inlined_call_operand.<no memory space> [shape: f32[1], index: 0, kind: input, shape index: {}]   ;;  %s814_s1 = inlined_call_operand.hbm [shape: f32[2,8,128], index: 1, kind: input, shape index: {}]   ;;  %s815_s2 = inlined_call_operand.hbm [shape: f32[2,8,128], index: 2, kind: output, shape index: {}]  }
   0x1   :  { %7 = sst [smem:[#allocation2]] %s813_s0 }
   0x2   :  { %8 = vsyncpa [#allocation4], 0 }
   0x3   :  { %10 = vsyncpa [#allocation4 + $0x1], 0 }
   0x4   :  { %11 = vsyncpa [#allocation5], 0 }
   0x5   :  { %13 = vsyncpa [#allocation5 + $0x1], 0  ;;  %s644_s11 = smov 0   ;;  %s646_s12 = smov 0  }
   0x6   :  { %s648_s13 = smov 0   ;;  %s650_s14 = smov 0  }
   0x7 LB: > { %s665_s0 = sadd.s32 4294967295, %s620_s14   ;;  %s445_s15 = sadd.s32 4294967294, %s620_s14   ;;  %s620_s14 = sphi %s650_s14, %s830_s14   ;;  %s616_s13 = sphi %s648_s13, %s829_s13   ;;  %s612_s12 = sphi %s646_s12, %s828_s12   ;;  %s608_s11 = sphi %s644_s11, %s827_s11  }
   0x8   : > { %s669_s16 = sadd.s32 1, %s620_s14   ;;  %s47_s17 = sadd.s32 1, %s616_s13 }
   0x9   : > { %s44_s18 = ssub.s32 %s620_s14, %s669_s16  ;;  %p54_p0 = scmp.ne.s32.totalorder %s616_s13, %s612_s12 }
   0xa   : > { %p45_p1 = scmp.eq.s32.totalorder %s44_s18, 0  ;;  %p55_p2 = scmp.eq.s32.totalorder %s620_s14, 0 }
   0xb   : > { %p60_p3 = scmp.ne.s32.totalorder %s612_s12, %s608_s11  ;;  %p61_p4 = scmp.eq.s32.totalorder %s665_s0, 0 }
   0xc   : > { %s681_s19 = scalar_select %p45_p1, %s616_s13, %s47_s17  }
   0xd   : > { %p683_p5 = por %p55_p2, %p54_p0  ;;  %p687_p6 = por %p61_p4, %p60_p3 }
   0xe   : > { %p84_p7 = scmp.eq.s32.totalorder %s665_s0, 1  ;;  %p90_p8 = scmp.eq.s32.totalorder %s445_s15, 1 }
   0xf   : > { %p484_p10 = scmp.lt.s32.totalorder %s620_s14, 2  ;;  %s113_s24 = sand.u32 1, %s616_s13  }
  0x10   : > { %p694_p11 = por %p84_p7, %p54_p0  ;;  %p698_p12 = por %p90_p8, %p60_p3 }
  0x11   : > { %s449_s25 = sshll.u32 %s620_s14, 7  ;;  %s448_s26 = sshll.u32 %s113_s24, 3 }
  0x12   : > { %s819_s22 = scalar_select %p694_p11, 1, 0 }
  0x13   : > { %s820_s23 = scalar_select %p698_p12, 1, 0 }
  0x14   : > { %s707_s29 = scalar_lea.hbm %s814_s1, %s449_s25  ;;  %s117_s30 = scalar_lea.vmem [#allocation3], %s448_s26 }
  0x15   : > { %s124_s3 = sshll.u32 %s117_s30, 4  ;;  %p711_p13 = pnand %p484_p10, %p683_p5  ;;  %s715_s3 = int_to_ptr.vmem [resolvable:$true] %s124_s3 }
  0x16   : > { %s114_s5 = scalar_lea.sflag [#allocation4], %s113_s24  ;;  %s524_s6 = scalar_lea.hbm %s707_s29, 128 }
  0x17   : > { %p525_p2 = scmp.ne.s32.totalorder %s707_s29, %s524_s6  ;;  %p526_p3 = pneg %p711_p13 }
  0x18   : > { %s529_s9 = scalar_lea.hbm %s814_s1, 256  ;;  %p530_p5 = scmp.lt.u32.totalorder %s707_s29, %s814_s1 }
  0x19   : > { %p527_p4 = pnand %p526_p3, %p525_p2  ;;  %p531_p8 = scmp.lt.u32.totalorder %s529_s9, %s524_s6 }
  0x1a   : > { %p533_p9 = scmp.lt.u32.totalorder %s524_s6, %s707_s29 }
  0x1b   : > { %p528_p7 = pneg %p527_p4  ;;  %p532_p10 = por %p531_p8, %p530_p5 }
  0x1d   : > { %p534_p0 = por %p533_p9, %p532_p10 }
  0x1f   : > { %p535_p1 = pnand %p534_p0, %p528_p7 }
  0x21   : > { %538 = shalt.err (!%p535_p1)
}
  0x22   : > { %s539_s17 = scalar_lea.vmem %s715_s3, 128  ;;  %s622_s18 = smov [#allocation3]  }
  0x23   : > { %p540_p2 = scmp.ne.s32.totalorder %s715_s3, %s539_s17  ;;  %s544_s20 = sshll.u32 %s622_s18, 4  ;;  %s545_s20 = int_to_ptr.vmem [resolvable:$false] %s544_s20 }
  0x24   : > { %s546_s24 = scalar_lea.vmem %s545_s20, 256  ;;  %p547_p11 = scmp.lt.s32.totalorder %s715_s3, %s545_s20 }
  0x25   : > { %p542_p4 = pnand %p540_p2, %p526_p3  ;;  %p548_p5 = scmp.lt.s32.totalorder %s546_s24, %s539_s17 }
  0x27   : > { %p543_p12 = pneg %p542_p4  ;;  %p549_p8 = por %p548_p5, %p547_p11 }
  0x29   : > { %p550_p9 = pnand %p549_p8, %p543_p12 }
  0x2b   : > { %553 = shalt.err (!%p550_p9)
}
  0x2c   : > { %479 = dma.hbm_to_vmem [thread:$0]  (!%p711_p13), %s707_s29, 128, %s715_s3, %s114_s5  }
  0x2d   : > { %p822_p0 = scmp.lt.s32.totalorder %s620_s14, 3  ;;  %p823_p1 = scmp.ge.s32.totalorder %s620_s14, 1 }
  0x2f   : > { %p130_p3 = pnand %p823_p1, %p822_p0 }
  0x30   : > { %s749_s25 = sand.u32 (!%p130_p3), 1, %s612_s12  }
  0x31   : > { %133 = sbr.rel (%p130_p3) target bundleno = 963 (0x3c3), region = 28  ;;  %s451_s26 = sshll.u32 (!%p130_p3), %s749_s25, 3 }
  0x32   : > { %s136_s27 = scalar_lea.sflag (!%p130_p3), [#allocation4], %s749_s25  ;;  %s139_s28 = scalar_lea.vmem (!%p130_p3), [#allocation3], %s451_s26 }
  0x38   : > { %599 = dma.done.wait (%p687_p6), %s136_s27, 128  }
  0x39   : > { %601 = vsyncadd (%p687_p6), %s136_s27, 4294967168  ;;  %v623_v0 = vmov 0.0   ;;  %vm624_vm0 = vmmov 0   ;;  %v160_v1 = vld [vmem:[%s139_s28] sm:$0xff]  ;;  %vm231_vm1 = vcmask 64512   ;;  %s356_s21 = sld [smem:[#allocation2]] }
  0x3a   : > { %462 = vmatprep.subr.mxu0 %v623_v0  ;;  %464 = vmatprep.mubr.msk.f32.mxu0 %vm624_vm0, %v623_v0  ;;  %s455_s29 = sshll.u32 %s665_s0, 7  ;;  %s159_s30 = scalar_lea.vmem [#allocation6], %s451_s26 }
  0x3b   : > { %467 = vmatprep.subr.mxu1 %v623_v0  ;;  %469 = vmatprep.mubr.msk.f32.mxu1 %vm624_vm0, %v623_v0  ;;  %s375_s3 = sshll.u32 %s159_s30, 4  ;;  %s769_s6 = scalar_lea.hbm %s815_s2, %s455_s29  ;;  %s771_s3 = int_to_ptr.vmem [resolvable:$true] %s375_s3 }
  0x3c   : > { %463 = vmatpush3.xpose.msra.mxu0 %v160_v1  ;;  %468 = vmatpush3.msra.mxu1 %v160_v1  ;;  %s362_s7 = scalar_lea.sflag [#allocation5], %s749_s25  ;;  %s554_s8 = scalar_lea.vmem %s771_s3, 128 }
  0x3d   : > { %p555_p6 = scmp.ne.s32.totalorder %s771_s3, %s554_s8  ;;  %p824_p11 = scmp.ne.s32.totalorder %s819_s22, 0 }
  0x3e   : > { %s625_s0 = smov [#allocation6]  }
  0x3f   : > { %465 = vmatmul.mubr.f32.vlgmr.msra.gmra.mrb[0].mxu0 %v160_v1  ;;  %v357_v22 = vstv %s356_s21  ;;  %p556_p12 = pnand %p555_p6, %p824_p11  ;;  %s558_s9 = sshll.u32 %s625_s0, 4  ;;  %s559_s9 = int_to_ptr.vmem [resolvable:$false] %s558_s9 }
  0x40   : > { %s560_s10 = scalar_lea.vmem %s559_s9, 256  ;;  %p561_p7 = scmp.lt.s32.totalorder %s771_s3, %s559_s9 }
  0x41   : > { %p557_p13 = pneg %p556_p12  ;;  %p562_p10 = scmp.lt.s32.totalorder %s560_s10, %s554_s8 }
  0x43   : > { %p563_p2 = por %p562_p10, %p561_p7 }
  0x45   : > { %p564_p4 = pnand %p563_p2, %p557_p13 }
 0x112   : > { %v227_v2 = vpop.f32.mrb[0].mxu0 }
 0x113   : > { %v232_v3 = vsel %vm231_vm1, %v227_v2, -inf  ;;  %v466_v4 = vpop.f32.mrb[1].mxu0 }
 0x114   : > { %v233_v5 = vrot.slane %v232_v3, 4 }
 0x116   : > { %v234_v6 = vmax.f32 %v232_v3, %v233_v5 }
 0x118   : > { %v235_v7 = vrot.slane %v234_v6, 2 }
 0x11a   : > { %v236_v8 = vmax.f32 %v234_v6, %v235_v7 }
 0x11c   : > { %v237_v9 = vrot.slane %v236_v8, 1 }
 0x11e   : > { %v238_v10 = vmax.f32 %v236_v8, %v237_v9 }
 0x120   : > { %v239_v11 = vsub.f32 %v238_v10, %v227_v2 }
 0x122   : > { %v240_v12 = vsel %vm231_vm1, %v239_v11, -inf }
 0x123   : > { %241 = vmax.xlane.f32.xlu0 %v240_v12 }
 0x1b0   : > { %v242_v13 = vpop.xlane.xlu0 %241 }
 0x1b1   : > { %v243_v14 = vsub.f32 %v239_v11, %v242_v13 }
 0x1b3   : > { %v244_v15 = vmul.f32 1.442695, %v243_v14 }
 0x1b5   : > { %520 = vpow2.f32 %v244_v15 }
 0x1bf   : > { %v521_v16 = vpop.eup %520 }
 0x1c0   : > { %v246_v17 = vsel %vm231_vm1, %v521_v16, 0.0 }
 0x1c1   : > { %247 = vadd.xlane.f32.xlu0 %v246_v17 }
 0x24e   : > { %v248_v18 = vpop.xlane.xlu0 %247 }
 0x24f   : > { %522 = vrcp.f32 %v248_v18 }
 0x259   : > { %v523_v19 = vpop.eup %522 }
 0x25a   : > { %v250_v20 = vmul.f32 %v523_v19, %v521_v16 }
 0x25c   : > { %251 = vxpose.xlu1.b32.start.end [1/1] (short) (narrow) %v250_v20, 8 }
 0x2dc   : > { %v267_v21 = vpop.trf.xlu1 }
 0x2dd   : > { %470 = vmatmul.mubr.msk.f32.vlgmr.msra.gmra.mrb[0].mxu1 %vm231_vm1, %v267_v21 }
 0x3b0   : > { %v352_v23 = vpop.f32.mrb[0].mxu1 }
 0x3b1   : > { %v358_v24 = vmul.f32 %v357_v22, %v352_v23  ;;  %v471_v25 = vpop.f32.mrb[1].mxu1 }
 0x3b3   : > { %v359_v26 = vadd.f32 %v358_v24, %v160_v1 }
 0x3b5   : > { %360 = vst [vmem:[%s159_s30] sm:$0xff] %v359_v26 }
 0x3b6   : > { %567 = shalt.err (!%p564_p4)
}
 0x3b7   : > { %s568_s15 = scalar_lea.hbm %s769_s6, 128  ;;  %s572_s20 = scalar_lea.hbm %s815_s2, 256 }
 0x3b8   : > { %p569_p5 = scmp.ne.s32.totalorder %s769_s6, %s568_s15  ;;  %p573_p0 = scmp.lt.u32.totalorder %s769_s6, %s815_s2 }
 0x3b9   : > { %p574_p1 = scmp.lt.u32.totalorder %s572_s20, %s568_s15  ;;  %p576_p6 = scmp.lt.u32.totalorder %s568_s15, %s769_s6 }
 0x3ba   : > { %p570_p8 = pnand %p569_p5, %p824_p11 }
 0x3bb   : > { %p575_p3 = por %p574_p1, %p573_p0 }
 0x3bc   : > { %p571_p9 = pneg %p570_p8 }
 0x3bd   : > { %p577_p12 = por %p576_p6, %p575_p3 }
 0x3bf   : > { %p578_p13 = pnand %p577_p12, %p571_p9 }
 0x3c1   : > { %581 = shalt.err (!%p578_p13)
}
 0x3c2   : > { %474 = dma.vmem_to_hbm [thread:$0]  (%p824_p11), %s771_s3, 128, %s769_s6, %s362_s7  }
 0x3c3 PF: > { %s387_s26 = sand.u32 1, %s608_s11   ;;  %p825_p7 = scmp.ne.s32.totalorder %s820_s23, 0 }
 0x3c4   : > { %p826_p10 = scmp.ge.s32.totalorder %s620_s14, 2  ;;  %s388_s27 = scalar_lea.sflag [#allocation5], %s387_s26 }
 0x3c6   : > { %p481_p2 = pnand %p826_p10, %p825_p7 }
 0x3c8   : > { %603 = dma.done.wait (!%p481_p2), %s388_s27, 128  }
 0x3c9   : > { %605 = vsyncadd (!%p481_p2), %s388_s27, 4294967168  ;;  %p16_p4 = scmp.ge.s32.totalorder %s669_s16, 4   ;;  %s827_s11 = smov %s612_s12 }
 0x3ca   : > { %s828_s12 = smov %s616_s13  ;;  %s829_s13 = smov %s681_s19 }
 0x3cb   : > { %s830_s14 = smov %s669_s16  ;;  %18 = sbr.rel (!%p16_p4) target bundleno = 7 (0x7), region = 73 }
 0x3d2   :  { %393 = vsyncpa [#allocation4], 1 }
 0x3d3   :  { %395 = vsyncpa [#allocation4 + $0x1], 1 }
 0x3d4   :  { %396 = vsyncpa [#allocation5], 1 }
 0x3d5   :  { %398 = vsyncpa [#allocation5 + $0x1], 1 }

</bundles_post_ra>
